<compile_context>
chip_gen: v6e
topology: v6e:2x2x1
jax: 0.10.0
libtpu: 0.0.40
codegen_flags: <defaults>
</compile_context>

<pallas_src>
import itertools
import numpy as np

import jax
import jax.numpy as jnp
from jax.experimental import pallas as pl
from jax.experimental.pallas import tpu as pltpu


def _round_up(x, m):
    return ((x + m - 1) // m) * m


def _make_cost_kernel(w_class, w_bbox, w_giou, use_focal, alpha, gamma, num_q, num_t):
    # Integer-gamma fast path: avoids jnp.power -> exp(gamma*log(x)) on the EUP.
    gi = int(round(gamma))
    int_gamma = (float(gi) == float(gamma)) and (0 <= gi <= 4)

    def _pow_gamma(x):
        if int_gamma:
            if gi == 0:
                return jnp.ones_like(x)
            r = x
            for _ in range(gi - 1):
                r = r * x
            return r
        return jnp.power(x, gamma)

    def cost_kernel(logits_ref, onehot_ref, pboxes_ref, tboxes_t_ref, out_ref):
        onehot = onehot_ref[...]                                     # [Cp, Tp]

        if use_focal:
            # Gather raw logits with the exact 0/1 one-hot matmul, then do every
            # transcendental on the small [TQ, Tp] tile instead of [TQ, Cp].
            x_g = jnp.dot(logits_ref[...], onehot,
                          preferred_element_type=jnp.float32)        # [TQ, Tp]
            g = 1.0 / (1.0 + jnp.exp(-x_g))                          # sigmoid(logits)[q, tgt_id[t]]
            neg_cost_class = (1.0 - alpha) * _pow_gamma(g) * (-jnp.log(1.0 - g + 1e-8))
            pos_cost_class = alpha * _pow_gamma(1.0 - g) * (-jnp.log(g + 1e-8))
            cost_class = pos_cost_class - neg_cost_class
        else:
            logits = logits_ref[...]                                 # [TQ, Cp]
            m = jnp.max(logits, axis=-1, keepdims=True)
            e = jnp.exp(logits - m)
            s = jnp.sum(e, axis=-1, keepdims=True)                   # [TQ, 1]
            # Defer the softmax divide until after the gather: TQ reciprocals +
            # TQ*Tp multiplies instead of TQ*Cp divides.
            ge = jnp.dot(e, onehot, preferred_element_type=jnp.float32)  # [TQ, Tp]
            cost_class = -(ge * pl.reciprocal(s))

        pb = pboxes_ref[...]                                         # [TQ, 4]
        tb = tboxes_t_ref[...]                                       # [4, Tp]
        pcx, pcy, pw, ph = pb[:, 0:1], pb[:, 1:2], pb[:, 2:3], pb[:, 3:4]   # [TQ,1]
        tcx, tcy, tw, th = tb[0:1, :], tb[1:2, :], tb[2:3, :], tb[3:4, :]   # [1,Tp]

        # L1 cdist (torch.cdist, p=1)
        cost_bbox = (jnp.abs(pcx - tcx) + jnp.abs(pcy - tcy)
                     + jnp.abs(pw - tw) + jnp.abs(ph - th))           # [TQ,Tp]

        # cxcywh -> xyxy
        px1, py1 = pcx - 0.5 * pw, pcy - 0.5 * ph
        px2, py2 = pcx + 0.5 * pw, pcy + 0.5 * ph
        tx1, ty1 = tcx - 0.5 * tw, tcy - 0.5 * th
        tx2, ty2 = tcx + 0.5 * tw, tcy + 0.5 * th

        area_p = (px2 - px1) * (py2 - py1)                            # [TQ,1]
        area_t = (tx2 - tx1) * (ty2 - ty1)                            # [1,Tp]

        iw = jnp.maximum(jnp.minimum(px2, tx2) - jnp.maximum(px1, tx1), 0.0)
        ih = jnp.maximum(jnp.minimum(py2, ty2) - jnp.maximum(py1, ty1), 0.0)
        inter = iw * ih
        union = area_p + area_t - inter
        iou = inter * pl.reciprocal(union)

        cw = jnp.maximum(px2, tx2) - jnp.minimum(px1, tx1)
        ch = jnp.maximum(py2, ty2) - jnp.minimum(py1, ty1)
        area_c = cw * ch
        # (area_c - union) / area_c == 1 - union / area_c
        giou = iou - 1.0 + union * pl.reciprocal(area_c)
        cost_giou = -giou

        total = w_bbox * cost_bbox + w_class * cost_class + w_giou * cost_giou

        # Zero the padded region (doubly-padded box pairs give 0/0 NaNs; focal
        # padded columns give large garbage) so nothing bad escapes the kernel.
        tq, tp = out_ref.shape
        row = jax.lax.broadcasted_iota(jnp.int32, (tq, tp), 0) + pl.program_id(0) * tq
        col = jax.lax.broadcasted_iota(jnp.int32, (tq, tp), 1)
        valid = (row < num_q) & (col < num_t)
        out_ref[...] = jnp.where(valid, total, 0.0).astype(out_ref.dtype)

    return cost_kernel


def compute_cost_matrix(pred_logits, pred_boxes, tgt_labels, tgt_boxes,
                        weight_dict, use_focal_loss=False, alpha=0.25, gamma=2.0):
    """Returns the [Q, T] matching cost matrix, computed in a Pallas kernel."""
    pred_logits = jnp.asarray(pred_logits, jnp.float32)
    pred_boxes = jnp.asarray(pred_boxes, jnp.float32)
    tgt_boxes = jnp.asarray(tgt_boxes, jnp.float32)
    tgt_labels = jnp.asarray(tgt_labels, jnp.int32)

    Q, C = pred_logits.shape
    T = int(tgt_labels.shape[0])

    # Pad to TPU-friendly shapes (sublane=8, lane=128); padding is masked + sliced off.
    Cp = _round_up(max(C, 128), 128)
    Tp = _round_up(max(T, 128), 128)

    # Pick the largest Q-tile whose (double-buffered) blocks stay well under the
    # v7x scoped-VMEM ceiling (~32 MiB scoped, 64 MiB physical).
    def _blocks_bytes(tq):
        per_step = tq * Cp + tq * Tp + tq * 4          # logits, out, pboxes
        resident = Cp * Tp + 4 * Tp                    # onehot, tboxes (constant blocks)
        return 4 * (2 * per_step + 2 * resident)       # f32, x2 for double buffering

    TQ = 8
    for cand in (512, 256, 128, 64, 32, 16, 8):
        if _blocks_bytes(cand) <= 24 * 1024 * 1024:
            TQ = cand
            break
    TQ = min(TQ, _round_up(max(Q, 8), 8))
    Qp = _round_up(max(Q, 8), TQ)

    # Softmax path: pad classes with -1e9 so they vanish from the softmax sum.
    # Focal path: padding value is irrelevant (one-hot zeroes padded classes).
    pad_val = 0.0 if use_focal_loss else -1e9
    logits_p = jnp.full((Qp, Cp), pad_val, jnp.float32).at[:Q, :C].set(pred_logits)
    onehot = jax.nn.one_hot(tgt_labels, C, dtype=jnp.float32)           # [T, C]
    onehot_p = jnp.zeros((Cp, Tp), jnp.float32).at[:C, :T].set(onehot.T)
    pboxes_p = jnp.zeros((Qp, 4), jnp.float32).at[:Q, :].set(pred_boxes)
    tboxes_t_p = jnp.zeros((4, Tp), jnp.float32).at[:, :T].set(tgt_boxes.T)

    kernel = _make_cost_kernel(
        float(weight_dict['cost_class']), float(weight_dict['cost_bbox']),
        float(weight_dict['cost_giou']), bool(use_focal_loss),
        float(alpha), float(gamma), Q, T)

    grid = (Qp // TQ,)
    flops = 2 * Qp * Cp * Tp + 60 * Qp * Tp
    transcendentals = (4 * Qp * Tp if use_focal_loss else Qp * Cp) + 3 * Qp * Tp
    bytes_accessed = 4 * (Qp * Cp + Cp * Tp + Qp * 4 + 4 * Tp + Qp * Tp)
    vmem_limit = int(min(max(_blocks_bytes(TQ) + 4 * 1024 * 1024,
                             16 * 1024 * 1024), 48 * 1024 * 1024))

    out = pl.pallas_call(
        kernel,
        out_shape=jax.ShapeDtypeStruct((Qp, Tp), jnp.float32),
        grid=grid,
        in_specs=[
            pl.BlockSpec((TQ, Cp), lambda i: (i, 0)),   # logits: tiled over Q
            pl.BlockSpec((Cp, Tp), lambda i: (0, 0)),   # one-hot: resident
            pl.BlockSpec((TQ, 4), lambda i: (i, 0)),    # pred boxes: tiled over Q
            pl.BlockSpec((4, Tp), lambda i: (0, 0)),    # tgt boxes^T: resident
        ],
        out_specs=pl.BlockSpec((TQ, Tp), lambda i: (i, 0)),
        compiler_params=pltpu.CompilerParams(
            dimension_semantics=("parallel",),          # megacore split on v7x
            vmem_limit_bytes=vmem_limit),
        cost_estimate=pl.CostEstimate(
            flops=flops, transcendentals=transcendentals,
            bytes_accessed=bytes_accessed),
    )(logits_p, onehot_p, pboxes_p, tboxes_t_p)

    return out[:Q, :T]


def _linear_sum_assignment(cost):
    """Hungarian assignment on host (scipy if available, brute force fallback)."""
    cost = np.asarray(cost, dtype=np.float64)
    n, m = cost.shape
    if min(n, m) == 0:
        return np.zeros((0,), np.int64), np.zeros((0,), np.int64)
    try:
        from scipy.optimize import linear_sum_assignment
        r, c = linear_sum_assignment(cost)
        return np.asarray(r, np.int64), np.asarray(c, np.int64)
    except ImportError:
        pass
    best, best_cost = None, np.inf
    if n <= m:
        rows = np.arange(n)
        for cols in itertools.permutations(range(m), n):
            s = cost[rows, list(cols)].sum()
            if s < best_cost:
                best_cost, best = s, (rows.copy(), np.array(cols, np.int64))
    else:
        cols = np.arange(m)
        for rs in itertools.permutations(range(n), m):
            s = cost[list(rs), cols].sum()
            if s < best_cost:
                best_cost, best = s, (np.array(rs, np.int64), cols.copy())
        order = np.argsort(best[0])
        best = (best[0][order], best[1][order])
    return best[0].astype(np.int64), best[1].astype(np.int64)


class HungarianMatcherMOT:
    """JAX/Pallas port of the PyTorch HungarianMatcherMOT forward pass."""

    def __init__(self, weight_dict, use_focal_loss=False, alpha=0.25, gamma=2.0):
        self.cost_class = weight_dict['cost_class']
        self.cost_bbox = weight_dict['cost_bbox']
        self.cost_giou = weight_dict['cost_giou']
        self.use_focal_loss = use_focal_loss
        self.alpha = alpha
        self.gamma = gamma
        assert self.cost_class != 0 or self.cost_bbox != 0 or self.cost_giou != 0, \
            'all costs cant be 0'

    def __call__(self, outputs, targets, outputs_batch_index, targets_batch_index, batch_size):
        C = compute_cost_matrix(
            outputs['pred_logits'], outputs['pred_boxes'],
            targets['labels'], targets['boxes'],
            {'cost_class': self.cost_class, 'cost_bbox': self.cost_bbox,
             'cost_giou': self.cost_giou},
            use_focal_loss=self.use_focal_loss, alpha=self.alpha, gamma=self.gamma)
        jax.block_until_ready(C)
        C_np = np.asarray(C)

        # TODO(synk): Hungarian assignment (scipy linear_sum_assignment) is a
        # sequential host-side algorithm with no clean Pallas equivalent; done on host.
        obi = np.asarray(outputs_batch_index)
        tbi = np.asarray(targets_batch_index)
        batch_idxes = set(np.unique(obi).tolist())
        indices = []
        non_idx = np.zeros((0,), dtype=np.int64)
        pred_idx_start = 0
        tgt_idx_start = 0
        for bi in range(batch_size):
            if bi not in batch_idxes:
                indices.append((non_idx, non_idx))
            else:
                num_pred = int((obi == bi).sum())
                num_tgt = int((tbi == bi).sum())
                sub = C_np[pred_idx_start:pred_idx_start + num_pred,
                           tgt_idx_start:tgt_idx_start + num_tgt]
                ri, ci = _linear_sum_assignment(sub)
                indices.append((ri, ci))
                pred_idx_start += num_pred
                tgt_idx_start += num_tgt
        return indices, C


def _reference_cost_matrix(pred_logits, pred_boxes, tgt_labels, tgt_boxes, wd,
                           use_focal_loss=False, alpha=0.25, gamma=2.0):
    """Plain-jnp reference of the cost matrix for sanity checking."""
    if use_focal_loss:
        prob = jax.nn.sigmoid(pred_logits)
        g = prob[:, tgt_labels]
        neg = (1.0 - alpha) * (g ** gamma) * (-jnp.log(1.0 - g + 1e-8))
        pos = alpha * ((1.0 - g) ** gamma) * (-jnp.log(g + 1e-8))
        cost_class = pos - neg
    else:
        prob = jax.nn.softmax(pred_logits, axis=-1)
        cost_class = -prob[:, tgt_labels]
    cost_bbox = jnp.sum(jnp.abs(pred_boxes[:, None, :] - tgt_boxes[None, :, :]), axis=-1)

    def to_xyxy(b):
        cx, cy, w, h = b[:, 0], b[:, 1], b[:, 2], b[:, 3]
        return jnp.stack([cx - 0.5 * w, cy - 0.5 * h, cx + 0.5 * w, cy + 0.5 * h], axis=-1)

    p, t = to_xyxy(pred_boxes), to_xyxy(tgt_boxes)
    area_p = (p[:, 2] - p[:, 0]) * (p[:, 3] - p[:, 1])
    area_t = (t[:, 2] - t[:, 0]) * (t[:, 3] - t[:, 1])
    lt = jnp.maximum(p[:, None, :2], t[None, :, :2])
    rb = jnp.minimum(p[:, None, 2:], t[None, :, 2:])
    wh = jnp.clip(rb - lt, 0.0)
    inter = wh[..., 0] * wh[..., 1]
    union = area_p[:, None] + area_t[None, :] - inter
    iou = inter / union
    lt2 = jnp.minimum(p[:, None, :2], t[None, :, :2])
    rb2 = jnp.maximum(p[:, None, 2:], t[None, :, 2:])
    wh2 = rb2 - lt2
    area_c = wh2[..., 0] * wh2[..., 1]
    giou = iou - (area_c - union) / area_c
    return wd['cost_bbox'] * cost_bbox + wd['cost_class'] * cost_class + wd['cost_giou'] * (-giou)


if __name__ == "__main__":
    key = jax.random.PRNGKey(0)
    k1, k2, k3, k4, k5, k6 = jax.random.split(key, 6)

    batch_size = 2
    num_classes = 8
    # queries per batch: [6, 10] -> 16 total;  targets per batch: [3, 5] -> 8 total
    num_queries = 16
    num_targets = 8

    pred_logits = jax.random.normal(k1, (num_queries, num_classes), jnp.float32)
    pred_boxes = jnp.concatenate([
        jax.random.uniform(k2, (num_queries, 2), minval=0.2, maxval=0.8),
        jax.random.uniform(k3, (num_queries, 2), minval=0.05, maxval=0.3),
    ], axis=-1)
    tgt_labels = jax.random.randint(k4, (num_targets,), 0, num_classes)
    tgt_boxes = jnp.concatenate([
        jax.random.uniform(k5, (num_targets, 2), minval=0.2, maxval=0.8),
        jax.random.uniform(k6, (num_targets, 2), minval=0.05, maxval=0.3),
    ], axis=-1)

    outputs_batch_index = jnp.array([0] * 6 + [1] * 10, jnp.int32)
    targets_batch_index = jnp.array([0] * 3 + [1] * 5, jnp.int32)

    weight_dict = {'cost_class': 2.0, 'cost_bbox': 5.0, 'cost_giou': 2.0}
    matcher = HungarianMatcherMOT(weight_dict, use_focal_loss=False)

    outputs = {'pred_logits': pred_logits, 'pred_boxes': pred_boxes}
    targets = {'labels': tgt_labels, 'boxes': tgt_boxes}

    indices, C_kernel = matcher(outputs, targets, outputs_batch_index,
                                targets_batch_index, batch_size)
    jax.block_until_ready(C_kernel)

    # sanity check against a plain-JAX reference (softmax path)
    C_ref = _reference_cost_matrix(pred_logits, pred_boxes, tgt_labels, tgt_boxes,
                                   weight_dict, use_focal_loss=False)
    np.testing.assert_allclose(np.asarray(C_kernel), np.asarray(C_ref), rtol=1e-5, atol=1e-5)

    # sanity check the focal-loss path as well
    C_focal = compute_cost_matrix(pred_logits, pred_boxes, tgt_labels, tgt_boxes,
                                  weight_dict, use_focal_loss=True, alpha=0.25, gamma=2.0)
    jax.block_until_ready(C_focal)
    C_focal_ref = _reference_cost_matrix(pred_logits, pred_boxes, tgt_labels, tgt_boxes,
                                         weight_dict, use_focal_loss=True,
                                         alpha=0.25, gamma=2.0)
    np.testing.assert_allclose(np.asarray(C_focal), np.asarray(C_focal_ref),
                               rtol=1e-5, atol=1e-5)

    assert len(indices) == batch_size
    for ri, ci in indices:
        assert ri.shape == ci.shape

    print("KERNEL_OK")
</pallas_src>

<mosaic_0001>
module attributes {stable_mosaic.version = 11 : i64} {
  func.func @cost_kernel(%arg0: i32, %arg1: memref<16x128xf32, #tpu.memory_space<vmem>>, %arg2: memref<128x128xf32, #tpu.memory_space<vmem>>, %arg3: memref<16x4xf32, #tpu.memory_space<vmem>>, %arg4: memref<4x128xf32, #tpu.memory_space<vmem>>, %arg5: memref<16x128xf32, #tpu.memory_space<vmem>>) attributes {dimension_semantics = [#tpu.dimension_semantics<parallel>], iteration_bounds = array<i64: 1>, scalar_prefetch = 0 : i64, scratch_operands = 0 : i64, tpu.core_type = #tpu.core_type<tc>, window_params = [{transform_indices = @transform_0, window_bounds = array<i64: 16, 128>}, {pipeline_mode = #tpu.pipeline_mode<synchronous>, transform_indices = @transform_1, window_bounds = array<i64: 128, 128>}, {transform_indices = @transform_2, window_bounds = array<i64: 16, 4>}, {pipeline_mode = #tpu.pipeline_mode<synchronous>, transform_indices = @transform_3, window_bounds = array<i64: 4, 128>}, {transform_indices = @transform_4, window_bounds = array<i64: 16, 128>}]} {
    %c0 = arith.constant 0 : index
    %c0_0 = arith.constant 0 : index
    %0 = vector.load %arg2[%c0, %c0_0] : memref<128x128xf32, #tpu.memory_space<vmem>>, vector<128x128xf32>
    %c0_1 = arith.constant 0 : index
    %c0_2 = arith.constant 0 : index
    %1 = vector.load %arg1[%c0_1, %c0_2] : memref<16x128xf32, #tpu.memory_space<vmem>>, vector<16x128xf32>
    %cst = arith.constant dense<0xFF800000> : vector<16xf32>
    %2 = vector.multi_reduction <maximumf>, %1, %cst [1] : vector<16x128xf32> to vector<16xf32>
    %3 = vector.shape_cast %2 : vector<16xf32> to vector<16x1xf32>
    %4 = vector.broadcast %3 : vector<16x1xf32> to vector<16x128xf32>
    %5 = arith.subf %1, %4 : vector<16x128xf32>
    %6 = math.exp %5 : vector<16x128xf32>
    %cst_3 = arith.constant dense<0.000000e+00> : vector<16xf32>
    %7 = vector.multi_reduction <add>, %6, %cst_3 [1] : vector<16x128xf32> to vector<16xf32>
    %8 = vector.shape_cast %7 : vector<16xf32> to vector<16x1xf32>
    %cst_4 = arith.constant dense<0.000000e+00> : vector<16x128xf32>
    %9 = tpu.matmul %6, %0, %cst_4 {dimension_numbers = #tpu.dot_dimension_numbers<[1], [0], [0], [1], [0, 0, 1, 1], [], []>} : vector<16x128xf32>, vector<128x128xf32>, vector<16x128xf32> -> vector<16x128xf32>
    %10 = tpu.reciprocal %8 : vector<16x1xf32> -> vector<16x1xf32>
    %11 = vector.broadcast %10 : vector<16x1xf32> to vector<16x128xf32>
    %12 = arith.mulf %9, %11 : vector<16x128xf32>
    %cst_5 = arith.constant 0.000000e+00 : f32
    %13 = vector.broadcast %cst_5 : f32 to vector<16x128xf32>
    %14 = arith.subf %13, %12 : vector<16x128xf32>
    %c0_6 = arith.constant 0 : index
    %c0_7 = arith.constant 0 : index
    %15 = vector.load %arg3[%c0_6, %c0_7] : memref<16x4xf32, #tpu.memory_space<vmem>>, vector<16x4xf32>
    %c0_8 = arith.constant 0 : index
    %c0_9 = arith.constant 0 : index
    %16 = vector.load %arg4[%c0_8, %c0_9] : memref<4x128xf32, #tpu.memory_space<vmem>>, vector<4x128xf32>
    %17 = vector.extract_strided_slice %15 {offsets = [0, 0], sizes = [16, 1], strides = [1, 1]} : vector<16x4xf32> to vector<16x1xf32>
    %18 = vector.extract_strided_slice %15 {offsets = [0, 1], sizes = [16, 1], strides = [1, 1]} : vector<16x4xf32> to vector<16x1xf32>
    %19 = vector.extract_strided_slice %15 {offsets = [0, 2], sizes = [16, 1], strides = [1, 1]} : vector<16x4xf32> to vector<16x1xf32>
    %20 = vector.extract_strided_slice %15 {offsets = [0, 3], sizes = [16, 1], strides = [1, 1]} : vector<16x4xf32> to vector<16x1xf32>
    %21 = vector.extract_strided_slice %16 {offsets = [0, 0], sizes = [1, 128], strides = [1, 1]} : vector<4x128xf32> to vector<1x128xf32>
    %22 = vector.extract_strided_slice %16 {offsets = [1, 0], sizes = [1, 128], strides = [1, 1]} : vector<4x128xf32> to vector<1x128xf32>
    %23 = vector.extract_strided_slice %16 {offsets = [2, 0], sizes = [1, 128], strides = [1, 1]} : vector<4x128xf32> to vector<1x128xf32>
    %24 = vector.extract_strided_slice %16 {offsets = [3, 0], sizes = [1, 128], strides = [1, 1]} : vector<4x128xf32> to vector<1x128xf32>
    %25 = vector.broadcast %17 : vector<16x1xf32> to vector<16x128xf32>
    %26 = vector.broadcast %21 : vector<1x128xf32> to vector<16x128xf32>
    %27 = arith.subf %25, %26 : vector<16x128xf32>
    %28 = math.absf %27 : vector<16x128xf32>
    %29 = vector.broadcast %18 : vector<16x1xf32> to vector<16x128xf32>
    %30 = vector.broadcast %22 : vector<1x128xf32> to vector<16x128xf32>
    %31 = arith.subf %29, %30 : vector<16x128xf32>
    %32 = math.absf %31 : vector<16x128xf32>
    %33 = arith.addf %28, %32 : vector<16x128xf32>
    %34 = vector.broadcast %19 : vector<16x1xf32> to vector<16x128xf32>
    %35 = vector.broadcast %23 : vector<1x128xf32> to vector<16x128xf32>
    %36 = arith.subf %34, %35 : vector<16x128xf32>
    %37 = math.absf %36 : vector<16x128xf32>
    %38 = arith.addf %33, %37 : vector<16x128xf32>
    %39 = vector.broadcast %20 : vector<16x1xf32> to vector<16x128xf32>
    %40 = vector.broadcast %24 : vector<1x128xf32> to vector<16x128xf32>
    %41 = arith.subf %39, %40 : vector<16x128xf32>
    %42 = math.absf %41 : vector<16x128xf32>
    %43 = arith.addf %38, %42 : vector<16x128xf32>
    %cst_10 = arith.constant 5.000000e-01 : f32
    %44 = vector.broadcast %cst_10 : f32 to vector<16x1xf32>
    %45 = arith.mulf %44, %19 : vector<16x1xf32>
    %46 = arith.subf %17, %45 : vector<16x1xf32>
    %cst_11 = arith.constant 5.000000e-01 : f32
    %47 = vector.broadcast %cst_11 : f32 to vector<16x1xf32>
    %48 = arith.mulf %47, %20 : vector<16x1xf32>
    %49 = arith.subf %18, %48 : vector<16x1xf32>
    %cst_12 = arith.constant 5.000000e-01 : f32
    %50 = vector.broadcast %cst_12 : f32 to vector<16x1xf32>
    %51 = arith.mulf %50, %19 : vector<16x1xf32>
    %52 = arith.addf %17, %51 : vector<16x1xf32>
    %cst_13 = arith.constant 5.000000e-01 : f32
    %53 = vector.broadcast %cst_13 : f32 to vector<16x1xf32>
    %54 = arith.mulf %53, %20 : vector<16x1xf32>
    %55 = arith.addf %18, %54 : vector<16x1xf32>
    %cst_14 = arith.constant 5.000000e-01 : f32
    %56 = vector.broadcast %cst_14 : f32 to vector<1x128xf32>
    %57 = arith.mulf %56, %23 : vector<1x128xf32>
    %58 = arith.subf %21, %57 : vector<1x128xf32>
    %cst_15 = arith.constant 5.000000e-01 : f32
    %59 = vector.broadcast %cst_15 : f32 to vector<1x128xf32>
    %60 = arith.mulf %59, %24 : vector<1x128xf32>
    %61 = arith.subf %22, %60 : vector<1x128xf32>
    %cst_16 = arith.constant 5.000000e-01 : f32
    %62 = vector.broadcast %cst_16 : f32 to vector<1x128xf32>
    %63 = arith.mulf %62, %23 : vector<1x128xf32>
    %64 = arith.addf %21, %63 : vector<1x128xf32>
    %cst_17 = arith.constant 5.000000e-01 : f32
    %65 = vector.broadcast %cst_17 : f32 to vector<1x128xf32>
    %66 = arith.mulf %65, %24 : vector<1x128xf32>
    %67 = arith.addf %22, %66 : vector<1x128xf32>
    %68 = arith.subf %52, %46 : vector<16x1xf32>
    %69 = arith.subf %55, %49 : vector<16x1xf32>
    %70 = arith.mulf %68, %69 : vector<16x1xf32>
    %71 = arith.subf %64, %58 : vector<1x128xf32>
    %72 = arith.subf %67, %61 : vector<1x128xf32>
    %73 = arith.mulf %71, %72 : vector<1x128xf32>
    %74 = vector.broadcast %52 : vector<16x1xf32> to vector<16x128xf32>
    %75 = vector.broadcast %64 : vector<1x128xf32> to vector<16x128xf32>
    %76 = arith.minimumf %74, %75 : vector<16x128xf32>
    %77 = vector.broadcast %46 : vector<16x1xf32> to vector<16x128xf32>
    %78 = vector.broadcast %58 : vector<1x128xf32> to vector<16x128xf32>
    %79 = arith.maximumf %77, %78 : vector<16x128xf32>
    %80 = arith.subf %76, %79 : vector<16x128xf32>
    %cst_18 = arith.constant 0.000000e+00 : f32
    %81 = vector.broadcast %cst_18 : f32 to vector<16x128xf32>
    %82 = arith.maximumf %80, %81 : vector<16x128xf32>
    %83 = vector.broadcast %55 : vector<16x1xf32> to vector<16x128xf32>
    %84 = vector.broadcast %67 : vector<1x128xf32> to vector<16x128xf32>
    %85 = arith.minimumf %83, %84 : vector<16x128xf32>
    %86 = vector.broadcast %49 : vector<16x1xf32> to vector<16x128xf32>
    %87 = vector.broadcast %61 : vector<1x128xf32> to vector<16x128xf32>
    %88 = arith.maximumf %86, %87 : vector<16x128xf32>
    %89 = arith.subf %85, %88 : vector<16x128xf32>
    %cst_19 = arith.constant 0.000000e+00 : f32
    %90 = vector.broadcast %cst_19 : f32 to vector<16x128xf32>
    %91 = arith.maximumf %89, %90 : vector<16x128xf32>
    %92 = arith.mulf %82, %91 : vector<16x128xf32>
    %93 = vector.broadcast %70 : vector<16x1xf32> to vector<16x128xf32>
    %94 = vector.broadcast %73 : vector<1x128xf32> to vector<16x128xf32>
    %95 = arith.addf %93, %94 : vector<16x128xf32>
    %96 = arith.subf %95, %92 : vector<16x128xf32>
    %97 = tpu.reciprocal %96 : vector<16x128xf32> -> vector<16x128xf32>
    %98 = arith.mulf %92, %97 : vector<16x128xf32>
    %99 = vector.broadcast %52 : vector<16x1xf32> to vector<16x128xf32>
    %100 = vector.broadcast %64 : vector<1x128xf32> to vector<16x128xf32>
    %101 = arith.maximumf %99, %100 : vector<16x128xf32>
    %102 = vector.broadcast %46 : vector<16x1xf32> to vector<16x128xf32>
    %103 = vector.broadcast %58 : vector<1x128xf32> to vector<16x128xf32>
    %104 = arith.minimumf %102, %103 : vector<16x128xf32>
    %105 = arith.subf %101, %104 : vector<16x128xf32>
    %106 = vector.broadcast %55 : vector<16x1xf32> to vector<16x128xf32>
    %107 = vector.broadcast %67 : vector<1x128xf32> to vector<16x128xf32>
    %108 = arith.maximumf %106, %107 : vector<16x128xf32>
    %109 = vector.broadcast %49 : vector<16x1xf32> to vector<16x128xf32>
    %110 = vector.broadcast %61 : vector<1x128xf32> to vector<16x128xf32>
    %111 = arith.minimumf %109, %110 : vector<16x128xf32>
    %112 = arith.subf %108, %111 : vector<16x128xf32>
    %113 = arith.mulf %105, %112 : vector<16x128xf32>
    %cst_20 = arith.constant 1.000000e+00 : f32
    %114 = vector.broadcast %cst_20 : f32 to vector<16x128xf32>
    %115 = arith.subf %98, %114 : vector<16x128xf32>
    %116 = tpu.reciprocal %113 : vector<16x128xf32> -> vector<16x128xf32>
    %117 = arith.mulf %96, %116 : vector<16x128xf32>
    %118 = arith.addf %115, %117 : vector<16x128xf32>
    %cst_21 = arith.constant 0.000000e+00 : f32
    %119 = vector.broadcast %cst_21 : f32 to vector<16x128xf32>
    %120 = arith.subf %119, %118 : vector<16x128xf32>
    %cst_22 = arith.constant 5.000000e+00 : f32
    %121 = vector.broadcast %cst_22 : f32 to vector<16x128xf32>
    %122 = arith.mulf %121, %43 : vector<16x128xf32>
    %cst_23 = arith.constant 2.000000e+00 : f32
    %123 = vector.broadcast %cst_23 : f32 to vector<16x128xf32>
    %124 = arith.mulf %123, %14 : vector<16x128xf32>
    %125 = arith.addf %122, %124 : vector<16x128xf32>
    %cst_24 = arith.constant 2.000000e+00 : f32
    %126 = vector.broadcast %cst_24 : f32 to vector<16x128xf32>
    %127 = arith.mulf %126, %120 : vector<16x128xf32>
    %128 = arith.addf %125, %127 : vector<16x128xf32>
    %129 = tpu.iota {dimensions = array<i32: 0>} : vector<16x128xi32>
    %c16_i32 = arith.constant 16 : i32
    %130 = arith.muli %arg0, %c16_i32 : i32
    %131 = vector.broadcast %130 : i32 to vector<16x128xi32>
    %132 = arith.addi %129, %131 : vector<16x128xi32>
    %133 = tpu.iota {dimensions = array<i32: 1>} : vector<16x128xi32>
    %c16_i32_25 = arith.constant 16 : i32
    %134 = vector.broadcast %c16_i32_25 : i32 to vector<16x128xi32>
    %135 = arith.cmpi slt, %132, %134 : vector<16x128xi32>
    %c8_i32 = arith.constant 8 : i32
    %136 = vector.broadcast %c8_i32 : i32 to vector<16x128xi32>
    %137 = arith.cmpi slt, %133, %136 : vector<16x128xi32>
    %138 = arith.andi %135, %137 : vector<16x128xi1>
    %cst_26 = arith.constant 0.000000e+00 : f32
    %139 = vector.broadcast %cst_26 : f32 to vector<16x128xf32>
    %140 = arith.select %138, %128, %139 : vector<16x128xi1>, vector<16x128xf32>
    %c0_27 = arith.constant 0 : index
    %c0_28 = arith.constant 0 : index
    %141 = vector.load %arg5[%c0_27, %c0_28] : memref<16x128xf32, #tpu.memory_space<vmem>>, vector<16x128xf32>
    tpu.vector_store %arg5[%c0_27, %c0_28], %140 {strides = array<i32>} : memref<16x128xf32, #tpu.memory_space<vmem>>, vector<16x128xf32>,
    return
  }
  func.func @transform_0(%arg0: i32) -> (i32, i32) {
    %c0_i32 = arith.constant 0 : i32
    %c0_i32_0 = arith.constant 0 : i32
    return %arg0, %c0_i32 : i32, i32
  }
  func.func @transform_1(%arg0: i32) -> (i32, i32) {
    %c0_i32 = arith.constant 0 : i32
    %c0_i32_0 = arith.constant 0 : i32
    %c0_i32_1 = arith.constant 0 : i32
    return %c0_i32, %c0_i32_0 : i32, i32
  }
  func.func @transform_2(%arg0: i32) -> (i32, i32) {
    %c0_i32 = arith.constant 0 : i32
    %c0_i32_0 = arith.constant 0 : i32
    return %arg0, %c0_i32 : i32, i32
  }
  func.func @transform_3(%arg0: i32) -> (i32, i32) {
    %c0_i32 = arith.constant 0 : i32
    %c0_i32_0 = arith.constant 0 : i32
    %c0_i32_1 = arith.constant 0 : i32
    return %c0_i32, %c0_i32_0 : i32, i32
  }
  func.func @transform_4(%arg0: i32) -> (i32, i32) {
    %c0_i32 = arith.constant 0 : i32
    %c0_i32_0 = arith.constant 0 : i32
    return %arg0, %c0_i32 : i32, i32
  }
}

</mosaic_0001>

<bundles_post_ra>
// kernel: tpu_custom_call.1
= control target key start
LH: loop header
LB: loop body
LE: loop exit
PB: predicated region body
PF: predicated region fallthrough
CT: control target
= control target key end

     0   :  { %9 = vsyncpa [#allocation3], 0  ;;  %s684_s0 = inlined_call_operand.vmem [shape: f32[16,128], index: 0, kind: input, shape index: {}]   ;;  %s685_s1 = inlined_call_operand.hbm [shape: f32[128,128], index: 1, kind: input, shape index: {}]   ;;  %s686_s2 = inlined_call_operand.vmem [shape: f32[16,4], index: 2, kind: input, shape index: {}]   ;;  %s687_s3 = inlined_call_operand.vmem [shape: f32[4,128], index: 3, kind: input, shape index: {}]   ;;  %s688_s4 = inlined_call_operand.hbm [shape: f32[16,128], index: 4, kind: output, shape index: {}]  }
   0x1   :  { %10 = vsyncpa [#allocation4], 0  ;;  %s553_s15 = smov [#allocation2]  }
   0x2   :  { %s18_s16 = sshll.u32 %s553_s15, 4  ;;  %s19_s16 = int_to_ptr.vmem [resolvable:$true] %s18_s16 }
   0x3   :  { %s517_s17 = scalar_lea.vmem %s19_s16, 2048  ;;  %p522_p1 = scmp.lt.s32.totalorder %s19_s16, %s19_s16 }
   0x4   :  { %p518_p0 = scmp.ne.s32.totalorder %s19_s16, %s517_s17  ;;  %p523_p2 = scmp.lt.s32.totalorder %s517_s17, %s517_s17 }
   0x6   :  { %p524_p3 = por %p523_p2, %p522_p1 }
   0x8   :  { %p525_p4 = pnand %p524_p3, %p518_p0 }
   0xa   :  { %528 = shalt.err (!%p525_p4)
}
   0xb   :  { %s554_s18 = smov 128   ;;  %s555_s19 = smov 8  }
   0xc   :  { %24 = dma.hbm_to_vmem [thread:$0]  %s685_s1, 2048, %s19_s16, [#allocation3], %s554_s18, %s554_s18, %s555_s19  }
   0xd   :  { %549 = dma.done.wait [#allocation3], 2048  }
   0xe   :  { %550 = vsyncadd [#allocation3], 4294965248  ;;  %v556_v0 = vmov 0   ;;  %v557_v1 = vmov 1   ;;  %v599_v2 = vld [vmem:[%s686_s2] sm:$0xff]  ;;  %v604_v3 = vld [vmem:[%s686_s2 + $0x8] sm:$0xff]  ;;  %v158_v42 = vlaneseq }
   0xf   :  { %483 = vset.pattern.permute.xlu1 %v556_v0  ;;  %485 = vset.pattern.permute.xlu0 %v557_v1  ;;  %v609_v4 = vld [vmem:[%s684_s0] sm:$0xff]  ;;  %v220_v5 = vmul.f32 0.5, %v599_v2  ;;  %v616_v6 = vld [vmem:[%s684_s0 + $0x8] sm:$0xff]  ;;  %s558_s29 = smov 126   ;;  %v221_v7 = vmul.f32 0.5, %v604_v3  ;;  %v47_v8 = vld [vmem:[#allocation2 + $0x78] sm:$0xff] }
  0x10   :  { %50 = vmax.xlane.f32.xlu0 %v609_v4  ;;  %v46_v9 = vld [vmem:[#allocation2 + $0x70] sm:$0xff]  ;;  %438 = vmatprep.subr.mxu0 %v47_v8  ;;  %v45_v10 = vld [vmem:[#allocation2 + $0x68] sm:$0xff]  ;;  %v44_v11 = vld [vmem:[#allocation2 + $0x60] sm:$0xff]  ;;  %s559_s0 = smov 127   ;;  %v641_v45 = vshrl.u32 %v158_v42, 7  ;;  %v560_v48 = vmov 2  }
  0x11   :  { %224 = vrot.lane.b32.xlu1 %v220_v5, %s558_s29  ;;  %439 = vmatpush3.msra.mxu0 %v47_v8  ;;  %v43_v12 = vld [vmem:[#allocation2 + $0x58] sm:$0xff]  ;;  %v42_v13 = vld [vmem:[#allocation2 + $0x50] sm:$0xff]  ;;  %v41_v14 = vld [vmem:[#allocation2 + $0x48] sm:$0xff] }
  0x12   :  { %440 = vmatprep.subr.mxu0 %v46_v9  ;;  %v40_v15 = vld [vmem:[#allocation2 + $0x40] sm:$0xff]  ;;  %v39_v16 = vld [vmem:[#allocation2 + $0x38] sm:$0xff]  ;;  %v38_v17 = vld [vmem:[#allocation2 + $0x30] sm:$0xff]  ;;  %v644_v49 = vsub.s32 0, %v641_v45 }
  0x13   :  { %441 = vmatpush3.msra.mxu0 %v46_v9  ;;  %v37_v18 = vld [vmem:[#allocation2 + $0x28] sm:$0xff]  ;;  %v36_v19 = vld [vmem:[#allocation2 + $0x20] sm:$0xff]  ;;  %v35_v20 = vld [vmem:[#allocation2 + $0x18] sm:$0xff]  ;;  %v653_v9 = vsub.s32 1, %v641_v45 }
  0x14   :  { %52 = vmax.xlane.f32.xlu0 %v616_v6  ;;  %442 = vmatprep.subr.mxu0 %v45_v10  ;;  %v34_v21 = vld [vmem:[#allocation2 + $0x10] sm:$0xff]  ;;  %v33_v22 = vld [vmem:[#allocation2 + $0x8] sm:$0xff]  ;;  %v32_v23 = vld [vmem:[#allocation2] sm:$0xff] }
  0x15   :  { %226 = vrot.lane.b32.xlu1 %v221_v7, %s558_s29  ;;  %443 = vmatpush3.msra.mxu0 %v45_v10  ;;  %v637_v40 = vld [vmem:[%s687_s3] sm:$0xf]  ;;  %s562_s3 = smov [#allocation5]  }
  0x16   :  { %444 = vmatprep.subr.mxu0 %v44_v11  ;;  %v234_v43 = vmul.f32 0.5, %v637_v40  ;;  %s406_s5 = sshll.u32 %s562_s3, 4  ;;  %s407_s5 = int_to_ptr.vmem [resolvable:$true] %s406_s5 }
  0x17   :  { %445 = vmatpush3.msra.mxu0 %v44_v11  ;;  %s529_s6 = scalar_lea.vmem %s407_s5, 256  ;;  %p534_p6 = scmp.lt.s32.totalorder %s407_s5, %s407_s5 }
  0x18   :  { %446 = vmatprep.subr.mxu0 %v43_v12  ;;  %v236_v46 = vrot.slane %v234_v43, 2  ;;  %p530_p5 = scmp.ne.s32.totalorder %s407_s5, %s529_s6  ;;  %p535_p7 = scmp.lt.s32.totalorder %s529_s6, %s529_s6 }
  0x19   :  { %447 = vmatpush3.msra.mxu0 %v43_v12 }
  0x1a   :  { %448 = vmatprep.subr.mxu0 %v42_v13  ;;  %v239_v50 = vadd.f32 %v236_v46, %v637_v40  ;;  %v238_v51 = vsub.f32 %v637_v40, %v236_v46  ;;  %p536_p8 = por %p535_p7, %p534_p6 }
  0x1b   :  { %449 = vmatpush3.msra.mxu0 %v42_v13 }
  0x1c   :  { %450 = vmatprep.subr.mxu0 %v41_v14  ;;  %v270_v53 = vrot.slane %v239_v50, %v644_v49  ;;  %v286_v54 = vrot.slane %v238_v51, %v644_v49  ;;  %v304_v11 = vrot.slane %v239_v50, %v653_v9  ;;  %p537_p9 = pnand %p536_p8, %p530_p5 }
  0x1d   :  { %451 = vmatpush3.msra.mxu0 %v41_v14 }
  0x1e   :  { %452 = vmatprep.subr.mxu0 %v40_v15 }
  0x1f   :  { %453 = vmatpush3.msra.mxu0 %v40_v15 }
  0x20   :  { %454 = vmatprep.subr.mxu0 %v39_v16 }
  0x21   :  { %455 = vmatpush3.msra.mxu0 %v39_v16 }
  0x22   :  { %456 = vmatprep.subr.mxu0 %v38_v17 }
  0x23   :  { %457 = vmatpush3.msra.mxu0 %v38_v17 }
  0x24   :  { %458 = vmatprep.subr.mxu0 %v37_v18 }
  0x25   :  { %459 = vmatpush3.msra.mxu0 %v37_v18 }
  0x26   :  { %460 = vmatprep.subr.mxu0 %v36_v19 }
  0x27   :  { %461 = vmatpush3.msra.mxu0 %v36_v19 }
  0x28   :  { %462 = vmatprep.subr.mxu0 %v35_v20 }
  0x29   :  { %463 = vmatpush3.msra.mxu0 %v35_v20 }
  0x2a   :  { %464 = vmatprep.subr.mxu0 %v34_v21 }
  0x2b   :  { %465 = vmatpush3.msra.mxu0 %v34_v21 }
  0x2c   :  { %466 = vmatprep.subr.mxu0 %v33_v22 }
  0x2d   :  { %467 = vmatpush3.msra.mxu0 %v33_v22 }
  0x2e   :  { %468 = vmatprep.subr.mxu0 %v32_v23 }
  0x2f   :  { %469 = vmatpush3.msra.mxu0 %v32_v23 }
  0x83   :  { %v225_v24 = vpop.permute.xlu1 %224 }
  0x84   :  { %v230_v25 = vsub.f32 %v599_v2, %v225_v24  ;;  %v232_v26 = vadd.f32 %v225_v24, %v599_v2 }
  0x86   :  { %259 = vperm.xlu1 %483, %v232_v26   ;;  %v240_v27 = vsub.f32 %v232_v26, %v230_v25 }
  0x87   :  { %v227_v28 = vpop.permute.xlu1 %226 }
  0x88   :  { %v233_v29 = vadd.f32 %v227_v28, %v604_v3  ;;  %244 = vrot.lane.b32.xlu0 %v240_v27, %s559_s0  ;;  %v231_v30 = vsub.f32 %v604_v3, %v227_v28 }
  0x8a   :  { %264 = vperm.xlu1 %483, %v233_v29   ;;  %v628_v37 = vsub.f32 %v233_v29, %v231_v30 }
  0x8c   :  { %298 = vperm.xlu0 %485, %v233_v29  }
  0x8e   :  { %275 = vperm.xlu1 %483, %v230_v25  }
  0x90   :  { %486 = vset.pattern.permute.xlu0 %v556_v0 }
  0x92   :  { %280 = vperm.xlu1 %483, %v231_v30  }
  0x96   :  { %484 = vset.pattern.permute.xlu1 %v557_v1 }
  0x97   :  { %294 = vperm.xlu1 %484, %v232_v26  }
  0x99   :  { %v51_v31 = vpop.xlane.xlu0 %50 }
  0x9a   :  { %v54_v32 = vsub.f32 %v609_v4, %v51_v31 }
  0x9b   :  { %308 = vperm.xlu1 %484, %v230_v25  }
  0x9c   :  { %v56_v33 = vmul.f32 1.442695, %v54_v32 }
  0x9d   :  { %v53_v34 = vpop.xlane.xlu0 %52 }
  0x9e   :  { %493 = vpow2.f32 %v56_v33  ;;  %v55_v35 = vsub.f32 %v616_v6, %v53_v34 }
  0x9f   :  { %312 = vperm.xlu1 %484, %v231_v30  }
  0xa0   :  { %v58_v36 = vmul.f32 1.442695, %v55_v35 }
  0xa2   :  { %495 = vpow2.f32 %v58_v36 }
  0xa3   :  { %246 = vrot.lane.b32.xlu1 %v628_v37, %s559_s0 }
  0xa4   :  { %487 = vset.pattern.permute.xlu1 %v556_v0 }
  0xab   :  { %v494_v38 = vpop.eup %493 }
  0xac   :  { %470 = vmatprep.mubr.f32.mxu0 %v494_v38  ;;  %60 = vadd.xlane.f32.xlu0 %v494_v38  ;;  %v561_v38 = vmov 3  }
  0xaf   :  { %v496_v39 = vpop.eup %495 }
  0xb0   :  { %471 = vmatmul.mubr.f32.vlgmr.msra.gmra.mxu0 %v496_v39 }
  0xc7   :  { %62 = vadd.xlane.f32.xlu1 %v496_v39  ;;  %v252_v39 = vsub.f32 %v239_v50, %v238_v51 }
  0xd8   :  { %150 = vperm.xlu1 %487, %v599_v2  }
  0xdc   :  { %155 = vperm.xlu1 %487, %v604_v3  }
  0xfa   :  { %v245_v41 = vpop.permute.xlu0 %244 }
  0xfb   :  { %v250_v44 = vmul.f32 %v245_v41, %v240_v27 }
  0xfd   :  { %329 = vperm.xlu0 %486, %v250_v44  }
 0x101   :  { %v260_v47 = vpop.permute.xlu1 %259  ;;  %490 = vset.pattern.permute.xlu0 %v560_v48 }
 0x102   :  { %189 = vperm.xlu0 %490, %v604_v3   ;;  %v271_v56 = vmin.f32 %v260_v47, %v270_v53  ;;  %v349_v57 = vmax.f32 %v260_v47, %v270_v53 }
 0x105   :  { %v265_v52 = vpop.permute.xlu1 %264 }
 0x106   :  { %492 = vset.pattern.permute.xlu0 %v556_v0  ;;  %v272_v63 = vmin.f32 %v265_v52, %v270_v53  ;;  %v350_v4 = vmax.f32 %v265_v52, %v270_v53  ;;  %v318_v0 = vrot.slane %v238_v51, %v653_v9 }
 0x107   :  { %v299_v13 = vpop.permute.xlu0 %298 }
 0x108   :  { %v306_v20 = vmin.f32 %v299_v13, %v304_v11  ;;  %v356_v21 = vmax.f32 %v299_v13, %v304_v11 }
 0x109   :  { %v276_v55 = vpop.permute.xlu1 %275 }
 0x10a   :  { %v287_v58 = vmax.f32 %v276_v55, %v286_v54  ;;  %v351_v59 = vmin.f32 %v276_v55, %v286_v54 }
 0x10c   :  { %v289_v60 = vsub.f32 %v271_v56, %v287_v58  ;;  %v353_v61 = vsub.f32 %v349_v57, %v351_v59 }
 0x10d   :  { %v281_v62 = vpop.permute.xlu1 %280 }
 0x10e   :  { %v288_v5 = vmax.f32 %v281_v62, %v286_v54  ;;  %v352_v6 = vmin.f32 %v281_v62, %v286_v54  ;;  %v291_v22 = vmax.f32 %v289_v60, 0.0  ;;  %v177_v62 = vrot.slane %v637_v40, %v653_v9 }
 0x110   :  { %v290_v7 = vsub.f32 %v272_v63, %v288_v5  ;;  %v354_v8 = vsub.f32 %v350_v4, %v352_v6  ;;  %v194_v4 = vsub.s32 2, %v641_v45  ;;  %v161_v6 = vrot.slane %v637_v40, %v644_v49 }
 0x112   :  { %v295_v10 = vpop.permute.xlu1 %294  ;;  %v292_v32 = vmax.f32 %v290_v7, 0.0 }
 0x113   :  { %v305_v14 = vmin.f32 %v295_v10, %v304_v11  ;;  %v355_v15 = vmax.f32 %v295_v10, %v304_v11  ;;  %v195_v10 = vrot.slane %v637_v40, %v194_v4 }
 0x116   :  { %v309_v12 = vpop.permute.xlu1 %308 }
 0x117   :  { %v319_v16 = vmax.f32 %v309_v12, %v318_v0  ;;  %v357_v17 = vmin.f32 %v309_v12, %v318_v0 }
 0x119   :  { %v321_v18 = vsub.f32 %v305_v14, %v319_v16  ;;  %v359_v19 = vsub.f32 %v355_v15, %v357_v17 }
 0x11a   :  { %v313_v23 = vpop.permute.xlu1 %312 }
 0x11b   :  { %v323_v24 = vmax.f32 %v321_v18, 0.0  ;;  %v361_v25 = vmul.f32 %v359_v19, %v353_v61  ;;  %v320_v26 = vmax.f32 %v313_v23, %v318_v0  ;;  %v358_v27 = vmin.f32 %v313_v23, %v318_v0 }
 0x11d   :  { %v322_v28 = vsub.f32 %v306_v20, %v320_v26  ;;  %v360_v29 = vsub.f32 %v356_v21, %v358_v27  ;;  %v325_v30 = vmul.f32 %v323_v24, %v291_v22  ;;  %497 = vrcp.f32 %v361_v25 }
 0x11e   :  { %v247_v31 = vpop.permute.xlu1 %246 }
 0x11f   :  { %v324_v33 = vmax.f32 %v322_v28, 0.0  ;;  %v362_v34 = vmul.f32 %v360_v29, %v354_v8  ;;  %v251_v35 = vmul.f32 %v247_v31, %v628_v37  ;;  %v254_v37 = vrot.slane %v252_v39, 1 }
 0x120   :  { %v212_v8 = vsub.s32 3, %v641_v45 }
 0x121   :  { %334 = vperm.xlu1 %487, %v251_v35   ;;  %v658_v36 = vmul.f32 %v324_v33, %v292_v32  ;;  %v256_v41 = vmul.f32 %v254_v37, %v252_v39 }
 0x122   :  { %v213_v18 = vrot.slane %v637_v40, %v212_v8 }
 0x125   :  { %488 = vset.pattern.permute.xlu1 %v557_v1  ;;  %v340_v1 = vrot.slane %v256_v41, %v644_v49 }
 0x126   :  { %167 = vperm.xlu1 %488, %v599_v2  }
 0x12a   :  { %171 = vperm.xlu1 %488, %v604_v3   ;;  %v498_v52 = vpop.eup %497 }
 0x12e   :  { %489 = vset.pattern.permute.xlu1 %v560_v48 }
 0x12f   :  { %185 = vperm.xlu1 %489, %v599_v2  }
 0x133   :  { %491 = vset.pattern.permute.xlu1 %v561_v38 }
 0x134   :  { %203 = vperm.xlu1 %491, %v599_v2  }
 0x135   :  { %v61_v43 = vpop.xlane.xlu0 %60 }
 0x138   :  { %207 = vperm.xlu1 %491, %v604_v3  }
 0x150   :  { %v63_v56 = vpop.xlane.xlu1 %62 }
 0x154   :  { %v151_v57 = vpop.permute.xlu1 %150 }
 0x155   :  { %v162_v12 = vsub.f32 %v151_v57, %v161_v6 }
 0x157   :  { %v164_v49 = vand.u32 2147483647, %v162_v12 }
 0x158   :  { %v156_v3 = vpop.permute.xlu1 %155 }
 0x159   :  { %v163_v9 = vsub.f32 %v156_v3, %v161_v6 }
 0x15b   :  { %v165_v26 = vand.u32 2147483647, %v163_v9 }
 0x170   :  { %v472_v5 = vpop.f32.mrf.mxu0 }
 0x172   :  { %v130_v11 = vpop.f32.mrf.mxu0 }
 0x178   :  { %v330_v44 = vpop.permute.xlu0 %329 }
 0x179   :  { %v341_v46 = vadd.f32 %v340_v1, %v330_v44 }
 0x17b   :  { %v343_v47 = vsub.f32 %v341_v46, %v325_v30 }
 0x17d   :  { %499 = vrcp.f32 %v343_v47  ;;  %v367_v48 = vmul.f32 %v498_v52, %v343_v47  ;;  %v190_v15 = vpop.permute.xlu0 %189 }
 0x17e   :  { %501 = vrcp.f32 %v362_v34  ;;  %v197_v23 = vsub.f32 %v190_v15, %v195_v10 }
 0x17f   :  { %503 = vrcp.f32 %v61_v43 }
 0x180   :  { %505 = vrcp.f32 %v63_v56  ;;  %v199_v33 = vand.u32 2147483647, %v197_v23 }
 0x18a   :  { %v500_v53 = vpop.eup %499 }
 0x18b   :  { %v347_v54 = vmul.f32 %v500_v53, %v325_v30  ;;  %v502_v59 = vpop.eup %501 }
 0x18c   :  { %v504_v0 = vpop.eup %503 }
 0x18d   :  { %v418_v55 = vadd.f32 -1.0, %v347_v54  ;;  %v506_v19 = vpop.eup %505  ;;  %v141_v20 = vmul.f32 %v504_v0, %v130_v11 }
 0x18e   :  { %v142_v29 = vmul.f32 %v506_v19, %v472_v5 }
 0x18f   :  { %v369_v2 = vadd.f32 %v418_v55, %v367_v48  ;;  %v143_v30 = vsub.f32 0.0, %v141_v20 }
 0x190   :  { %v144_v43 = vsub.f32 0.0, %v142_v29 }
 0x191   :  { %v371_v39 = vsub.f32 0.0, %v369_v2 }
 0x192   :  { %v376_v55 = vmul.f32 2.0, %v144_v43 }
 0x193   :  { %v379_v52 = vmul.f32 2.0, %v371_v39 }
 0x19c   :  { %v335_v50 = vpop.permute.xlu1 %334 }
 0x19d   :  { %v342_v51 = vadd.f32 %v340_v1, %v335_v50  ;;  %v391_v1 = vand.u32 127, %v158_v42 }
 0x19f   :  { %v344_v58 = vsub.f32 %v342_v51, %v658_v36  ;;  %vm394_vm0 = vcmp.lt.s32.totalorder %v391_v1, 8 }
 0x1a1   :  { %507 = vrcp.f32 %v344_v58  ;;  %v368_v60 = vmul.f32 %v502_v59, %v344_v58  ;;  %v168_v61 = vpop.permute.xlu1 %167 }
 0x1a2   :  { %v178_v7 = vsub.f32 %v168_v61, %v177_v62 }
 0x1a4   :  { %v180_v17 = vand.u32 2147483647, %v178_v7 }
 0x1a5   :  { %v172_v63 = vpop.permute.xlu1 %171 }
 0x1a6   :  { %v179_v13 = vsub.f32 %v172_v63, %v177_v62  ;;  %v182_v27 = vadd.f32 %v180_v17, %v164_v49 }
 0x1a8   :  { %v181_v22 = vand.u32 2147483647, %v179_v13 }
 0x1aa   :  { %v186_v14 = vpop.permute.xlu1 %185  ;;  %v183_v32 = vadd.f32 %v181_v22, %v165_v26 }
 0x1ab   :  { %v196_v16 = vsub.f32 %v186_v14, %v195_v10 }
 0x1ac   :  { %v201_v44 = vadd.f32 %v199_v33, %v183_v32 }
 0x1ad   :  { %v198_v45 = vand.u32 2147483647, %v196_v16 }
 0x1ae   :  { %v508_v21 = vpop.eup %507 }
 0x1af   :  { %v348_v24 = vmul.f32 %v508_v21, %v658_v36  ;;  %v204_v25 = vpop.permute.xlu1 %203  ;;  %v200_v34 = vadd.f32 %v198_v45, %v182_v27  ;;  %v375_v36 = vmul.f32 2.0, %v143_v30 }
 0x1b0   :  { %v214_v28 = vsub.f32 %v204_v25, %v213_v18 }
 0x1b1   :  { %v419_v31 = vadd.f32 -1.0, %v348_v24 }
 0x1b2   :  { %v216_v40 = vand.u32 2147483647, %v214_v28 }
 0x1b3   :  { %v370_v35 = vadd.f32 %v419_v31, %v368_v60  ;;  %v208_v38 = vpop.permute.xlu1 %207 }
 0x1b4   :  { %v218_v37 = vadd.f32 %v216_v40, %v200_v34  ;;  %v215_v41 = vsub.f32 %v208_v38, %v213_v18 }
 0x1b5   :  { %v372_v48 = vsub.f32 0.0, %v370_v35 }
 0x1b6   :  { %v373_v46 = vmul.f32 5.0, %v218_v37  ;;  %v217_v47 = vand.u32 2147483647, %v215_v41 }
 0x1b7   :  { %v380_v3 = vmul.f32 2.0, %v372_v48 }
 0x1b8   :  { %v377_v53 = vadd.f32 %v375_v36, %v373_v46  ;;  %v219_v54 = vadd.f32 %v217_v47, %v201_v44 }
 0x1ba   :  { %v374_v56 = vmul.f32 5.0, %v219_v54  ;;  %v381_v57 = vadd.f32 %v379_v52, %v377_v53 }
 0x1bc   :  { %v378_v50 = vadd.f32 %v376_v55, %v374_v56  ;;  %v397_v2 = vsel %vm394_vm0, %v381_v57, 0.0 }
 0x1bd   :  { %399 = vst [vmem:[#allocation5] sm:$0xff] %v397_v2 }
 0x1be   :  { %v382_v51 = vadd.f32 %v380_v3, %v378_v50 }
 0x1c0   :  { %v398_v42 = vsel %vm394_vm0, %v382_v51, 0.0 }
 0x1c1   :  { %400 = vst [vmem:[#allocation5 + $0x8] sm:$0xff] %v398_v42 }
 0x1c2   :  { %540 = shalt.err (!%p537_p9)
}
 0x1c3   :  { %412 = dma.vmem_to_hbm [thread:$0]  %s407_s5, 256, %s688_s4, [#allocation4], %s554_s18, %s554_s18, %s555_s19  }
 0x1c4   :  { %551 = dma.done.wait [#allocation4], 256  }
 0x1c5   :  { %552 = vsyncadd [#allocation4], 4294967040 }
 0x1c6   :  { %416 = vsyncpa [#allocation3], 1 }
 0x1c7   :  { %417 = vsyncpa [#allocation4], 1 }

</bundles_post_ra>
